<compile_context>
chip_gen: v7x
topology: tpu7x:2x2x1
jax: 0.10.0
libtpu: 0.0.40
codegen_flags: <defaults>
</compile_context>

<pallas_src>
import math
import numpy as np
import jax
import jax.numpy as jnp
from jax.experimental import pallas as pl
from jax.experimental.pallas import tpu as pltpu


# ----------------------------------------------------------------------------
# Parameter construction (deterministic, mirrors InvConv2dLU.__init__)
# ----------------------------------------------------------------------------
def init_invconv_params(in_channel, seed=0):
    rng = np.random.RandomState(seed)
    weight = rng.randn(in_channel, in_channel)
    q, _ = np.linalg.qr(weight)
    # LU decomposition with partial pivoting (p @ l @ u == q)
    p, l, u = jax.scipy.linalg.lu(jnp.asarray(q, dtype=jnp.float32))
    p = np.asarray(p, dtype=np.float32)
    l = np.asarray(l, dtype=np.float32)
    u = np.asarray(u, dtype=np.float32)

    w_s = np.diag(u)
    w_u = np.triu(u, 1)
    u_mask = np.triu(np.ones_like(w_u), 1)
    l_mask = u_mask.T

    return {
        "w_p": jnp.asarray(p, jnp.float32),                    # buffer
        "u_mask": jnp.asarray(u_mask, jnp.float32),             # buffer
        "l_mask": jnp.asarray(l_mask, jnp.float32),             # buffer
        "s_sign": jnp.asarray(np.sign(w_s), jnp.float32),       # buffer
        "l_eye": jnp.eye(in_channel, dtype=jnp.float32),        # buffer
        "w_l": jnp.asarray(l, jnp.float32),                     # parameter
        "w_s": jnp.asarray(np.log(np.abs(w_s)), jnp.float32),   # parameter
        "w_u": jnp.asarray(w_u, jnp.float32),                   # parameter
    }


def calc_weight(params):
    # Tiny C x C parameter glue math — plain JAX, not worth a kernel.
    w = params["w_p"] @ (
        params["w_l"] * params["l_mask"] + params["l_eye"]
    ) @ (
        params["w_u"] * params["u_mask"]
        + jnp.diag(params["s_sign"] * jnp.exp(params["w_s"]))
    )
    return w  # (C_out, C_in)


# ----------------------------------------------------------------------------
# Pallas kernel: 1x1 conv = channel matmul on lane-dense (C_eff, TILE_HW) slabs
# ----------------------------------------------------------------------------
def _invconv_kernel(w_ref, x_ref, o_ref):
    # w_ref: (Ce, Ce)  folded (block-diagonal) conv weight (out, in)
    # x_ref: (TILE_N, Ce, TILE_HW) pixel block(s); o_ref: same shape.
    w = w_ref[...]
    for b in range(x_ref.shape[0]):   # static small unroll over the batch tile
        o_ref[b] = jnp.dot(
            w, x_ref[b],
            precision=jax.lax.Precision.HIGHEST,
            preferred_element_type=jnp.float32,
        ).astype(o_ref.dtype)


def _largest_divisor_leq(n, limit):
    """Largest d such that d | n and d <= limit (>= 1)."""
    limit = max(1, min(n, limit))
    best = 1
    d = 1
    while d * d <= n:
        if n % d == 0:
            q = n // d
            if d <= limit and d > best:
                best = d
            if q <= limit and q > best:
                best = q
        d += 1
    return best


def invconv2d_lu_forward(x, params, *, target_block_bytes=2 << 20):
    """x: (N, C, H, W) float32. Returns (out NCHW, logdet scalar)."""
    n, c, h, w = x.shape
    hw = h * w
    weight = calc_weight(params)                      # (C, C)

    # ---- fold images into channels when C < 8 (dense sublanes, free reshape)
    k = 1
    if c < 8 and 8 % c == 0:
        k = math.gcd(n, 8 // c)
    n_eff, c_eff = n // k, k * c
    if k > 1:
        weight = jnp.kron(jnp.eye(k, dtype=weight.dtype), weight)  # block-diag
    x3 = x.reshape(n_eff, c_eff, hw)                  # NCHW kept; no transpose

    # ---- lane-dense HW tile, sized toward ~target_block_bytes per x block ---
    bytes_per_col = c_eff * 4                         # f32
    max_tile_hw = max(128, (target_block_bytes // bytes_per_col) // 128 * 128)

    pad_hw = 0
    if hw <= max_tile_hw or bytes_per_col * hw <= 2 * target_block_bytes:
        tile_hw = hw                                  # full dim: always legal
    elif hw % 128 == 0:
        # exact multiple-of-128 divisor: no padding, no trailing slice
        tile_hw = 128 * _largest_divisor_leq(hw // 128, max_tile_hw // 128)
    else:
        # TODO(synk): ragged HW with no lane-dense divisor — a tail-only second
        # pallas_call would avoid these extra pad/slice HBM passes.
        tile_hw = max_tile_hw                         # multiple of 128
        pad_hw = pl.cdiv(hw, tile_hw) * tile_hw - hw
        x3 = jnp.pad(x3, ((0, 0), (0, 0), (0, pad_hw)))
    hw_len = hw + pad_hw
    assert tile_hw == hw_len or tile_hw % 128 == 0

    # ---- fold a batch tile into the block so small-HW shapes still move
    #      ~target bytes per grid step (capped to keep the unroll small) ------
    desired_tn = max(1, min(32, target_block_bytes // (bytes_per_col * tile_hw)))
    tile_n = _largest_divisor_leq(n_eff, desired_tn)

    # ---- guarantee >= 2 steps on a parallel axis (v7x has 2 TensorCores) ----
    if (n_eff // tile_n) * (hw_len // tile_hw) < 2:
        if pad_hw == 0 and hw % 128 == 0 and hw >= 256:
            tile_hw = 128 * _largest_divisor_leq(hw // 128, (hw // 128) // 2)
        elif tile_n >= 2 and tile_n % 2 == 0:
            tile_n //= 2

    grid = (n_eff // tile_n, hw_len // tile_hw)

    cost = pl.CostEstimate(
        flops=2 * n_eff * c_eff * c_eff * hw,
        transcendentals=0,
        bytes_accessed=2 * n * c * hw * 4 + c_eff * c_eff * 4,
    )

    out3 = pl.pallas_call(
        _invconv_kernel,
        out_shape=jax.ShapeDtypeStruct((n_eff, c_eff, hw_len), jnp.float32),
        grid_spec=pltpu.PrefetchScalarGridSpec(
            num_scalar_prefetch=0,
            grid=grid,
            in_specs=[
                # weight: tiny, same block every step (stays resident in VMEM)
                pl.BlockSpec((c_eff, c_eff), lambda ni, j: (0, 0)),
                # x: (TILE_N, C_eff, TILE_HW) lane-dense block
                pl.BlockSpec((tile_n, c_eff, tile_hw), lambda ni, j: (ni, 0, j)),
            ],
            out_specs=pl.BlockSpec((tile_n, c_eff, tile_hw),
                                   lambda ni, j: (ni, 0, j)),
        ),
        compiler_params=pltpu.CompilerParams(
            # No accumulator / resident output -> fully parallel grid.
            dimension_semantics=("parallel", "parallel"),
            # Safe on v5e/v6e/v7x; gives headroom for ~2-4 MiB double-buffered
            # in+out blocks even on v5e's 16 MiB scoped default.
            vmem_limit_bytes=32 << 20,
        ),
        cost_estimate=cost,
    )(weight, x3)

    if pad_hw:
        out3 = out3[:, :, :hw]
    out = out3.reshape(n, c, h, w)

    # logdet = H * W * sum(w_s): C-element reduction, plain JAX.
    logdet = (h * w) * jnp.sum(params["w_s"])
    return out, logdet


# ----------------------------------------------------------------------------
# Reference (plain JAX) for sanity check
# ----------------------------------------------------------------------------
def invconv2d_lu_reference(x, params):
    n, c, h, w = x.shape
    weight = calc_weight(params)
    out = jnp.einsum("nchw,oc->nohw", x, weight,
                     precision=jax.lax.Precision.HIGHEST)
    logdet = h * w * jnp.sum(params["w_s"])
    return out, logdet


if __name__ == "__main__":
    in_channel = 4
    params = init_invconv_params(in_channel, seed=0)

    key = jax.random.PRNGKey(0)
    x = jax.random.normal(key, (2, in_channel, 16, 16), dtype=jnp.float32)

    out, logdet = invconv2d_lu_forward(x, params)
    out = jax.block_until_ready(out)
    logdet = jax.block_until_ready(logdet)

    out_ref, logdet_ref = invconv2d_lu_reference(x, params)
    out_ref = jax.block_until_ready(out_ref)

    np.testing.assert_allclose(np.asarray(out), np.asarray(out_ref),
                               rtol=1e-4, atol=1e-4)
    np.testing.assert_allclose(np.asarray(logdet), np.asarray(logdet_ref),
                               rtol=1e-5, atol=1e-5)

    print("KERNEL_OK")
</pallas_src>

<mosaic_0001>
module attributes {stable_mosaic.version = 11 : i64} {
  func.func @_invconv_kernel(%arg0: i32, %arg1: i32, %arg2: memref<8x8xf32, #tpu.memory_space<vmem>>, %arg3: memref<1x8x128xf32, #tpu.memory_space<vmem>>, %arg4: memref<1x8x128xf32, #tpu.memory_space<vmem>>) attributes {dimension_semantics = [#tpu.dimension_semantics<parallel>, #tpu.dimension_semantics<parallel>], iteration_bounds = array<i64: 1, 2>, scalar_prefetch = 0 : i64, scratch_operands = 0 : i64, tpu.core_type = #tpu.core_type<tc>, window_params = [{pipeline_mode = #tpu.pipeline_mode<synchronous>, transform_indices = @transform_0, window_bounds = array<i64: 8, 8>}, {transform_indices = @transform_1, window_bounds = array<i64: 1, 8, 128>}, {transform_indices = @transform_2, window_bounds = array<i64: 1, 8, 128>}]} {
    %c0 = arith.constant 0 : index
    %c0_0 = arith.constant 0 : index
    %0 = vector.load %arg2[%c0, %c0_0] : memref<8x8xf32, #tpu.memory_space<vmem>>, vector<8x8xf32>
    %c0_1 = arith.constant 0 : index
    %c0_2 = arith.constant 0 : index
    %c0_3 = arith.constant 0 : index
    %1 = vector.load %arg3[%c0_1, %c0_2, %c0_3] : memref<1x8x128xf32, #tpu.memory_space<vmem>>, vector<1x8x128xf32>
    %2 = vector.shape_cast %1 : vector<1x8x128xf32> to vector<8x128xf32>
    %cst = arith.constant dense<0.000000e+00> : vector<8x128xf32>
    %3 = tpu.matmul %0, %2, %cst {dimension_numbers = #tpu.dot_dimension_numbers<[1], [0], [0], [1], [0, 0, 1, 1], [], []>, precision = #tpu.contract_precision<fp32>} : vector<8x8xf32>, vector<8x128xf32>, vector<8x128xf32> -> vector<8x128xf32>
    %c0_4 = arith.constant 0 : index
    %c0_5 = arith.constant 0 : index
    %c0_6 = arith.constant 0 : index
    %4 = vector.load %arg4[%c0_4, %c0_5, %c0_6] : memref<1x8x128xf32, #tpu.memory_space<vmem>>, vector<1x8x128xf32>
    %5 = vector.shape_cast %4 : vector<1x8x128xf32> to vector<8x128xf32>
    %6 = vector.shape_cast %3 : vector<8x128xf32> to vector<1x8x128xf32>
    tpu.vector_store %arg4[%c0_4, %c0_5, %c0_6], %6 {strides = array<i32>} : memref<1x8x128xf32, #tpu.memory_space<vmem>>, vector<1x8x128xf32>,
    return
  }
  func.func @transform_0(%arg0: i32, %arg1: i32) -> (i32, i32) {
    %c0_i32 = arith.constant 0 : i32
    %c0_i32_0 = arith.constant 0 : i32
    %c0_i32_1 = arith.constant 0 : i32
    return %c0_i32, %c0_i32_0 : i32, i32
  }
  func.func @transform_1(%arg0: i32, %arg1: i32) -> (i32, i32, i32) {
    %c0_i32 = arith.constant 0 : i32
    %c0_i32_0 = arith.constant 0 : i32
    return %arg0, %c0_i32, %arg1 : i32, i32, i32
  }
  func.func @transform_2(%arg0: i32, %arg1: i32) -> (i32, i32, i32) {
    %c0_i32 = arith.constant 0 : i32
    %c0_i32_0 = arith.constant 0 : i32
    return %arg0, %c0_i32, %arg1 : i32, i32, i32
  }
}

</mosaic_0001>

<bundles_post_ra>
// kernel: tpu_custom_call.1
= control target key start
LH: loop header
LB: loop body
LE: loop exit
PB: predicated region body
PF: predicated region fallthrough
CT: control target
= control target key end

     0   :  { %7 = vsyncpa [#allocation3], 0  ;;  %s1286_s0 = inlined_call_operand.hbm [shape: f32[8,8], index: 0, kind: input, shape index: {}]   ;;  %s1287_s1 = inlined_call_operand.hbm [shape: f32[1,8,256], index: 1, kind: input, shape index: {}]   ;;  %s1288_s2 = inlined_call_operand.hbm [shape: f32[1,8,256], index: 2, kind: output, shape index: {}]  }
   0x1   :  { %8 = vsyncpa [#allocation6], 0 }
   0x2   :  { %10 = vsyncpa [#allocation6 + $0x1], 0 }
   0x3   :  { %11 = vsyncpa [#allocation4], 0 }
   0x4   :  { %13 = vsyncpa [#allocation4 + $0x1], 0  ;;  %s1060_s9 = smov 0   ;;  %s1062_s10 = smov 0  }
   0x5   :  { %s1064_s11 = smov 0   ;;  %s1066_s12 = smov 0  }
   0x6   :  { %s1068_s13 = smov 0   ;;  %s1070_s14 = smov 0  }
   0x7 LB: > { %s753_s15 = sadd.s32 4294967295, %s1038_s14   ;;  %s754_s16 = sadd.s32 4294967294, %s1038_s14   ;;  %s1038_s14 = sphi %s1070_s14, %s19_s14   ;;  %s1034_s13 = sphi %s1068_s13, %s1313_s13   ;;  %s1030_s12 = sphi %s1066_s12, %s1312_s12   ;;  %s1026_s11 = sphi %s1064_s11, %s1311_s11   ;;  %s1022_s10 = sphi %s1062_s10, %s1310_s10   ;;  %s1018_s9 = sphi %s1060_s9, %s1309_s9  }
   0x8   : > { %p74_p0 = scmp.ne.s32.totalorder %s1022_s10, %s1018_s9  ;;  %p1094_p1 = scmp.eq.s32.totalorder %s753_s15, 0 }
   0x9   : > { %p1098_p2 = scmp.eq.s32.totalorder %s753_s15, 1  ;;  %p106_p3 = scmp.eq.s32.totalorder %s754_s16, 1 }
   0xa   : > { %s1293_s17 = scalar_select %p1094_p1, 1, 0 }
   0xb   : > { %s1294_s18 = scalar_select %p1098_p2, 1, 0 }
   0xc   : > { %p1104_p4 = por %p1094_p1, %p74_p0  ;;  %p755_p5 = scmp.ge.s32.totalorder %s1038_s14, 1 }
   0xd   : > { %p1109_p6 = por %p106_p3, %p74_p0  ;;  %p113_p7 = scmp.lt.s32.totalorder %s1038_s14, 3 }
   0xe   : > { %s1295_s19 = scalar_select %p1104_p4, 1, 0 }
   0xf   : > { %s1296_s20 = scalar_select %p1109_p6, 1, 0 }
  0x10   : > { %p1114_p8 = pnand %p755_p5, %p113_p7  ;;  %s1040_s22 = smov [#allocation2]  }
  0x11   : > { %s126_s23 = sshll.u32 %s1040_s22, 4  ;;  %s28_s25 = sadd.s32 1, %s1034_s13  ;;  %s127_s23 = int_to_ptr.vmem [resolvable:$true] %s126_s23 }
  0x12   : > { %s1297_s21 = scalar_select %p1114_p8, 1, 0 }
  0x13   : > { %p827_p10 = pneg %p1114_p8  ;;  %s61_s26 = sadd.s32 1, %s1026_s11 }
  0x14   : > { %p1129_p12 = scmp.ge.s32.totalorder %s28_s25, 2  ;;  %s894_s30 = scalar_lea.hbm %s1286_s0, 128 }
  0x15   : > { %p1123_p11 = pnand %p827_p10, %p1094_p1  ;;  %p895_p13 = scmp.ne.s32.totalorder %s1286_s0, %s894_s30 }
  0x16   : > { %s1299_s27 = scalar_select %p1129_p12, 1, 0 }
  0x17   : > { %p896_p0 = pneg %p1123_p11  ;;  %p901_p7 = scmp.lt.u32.totalorder %s894_s30, %s1286_s0 }
  0x19   : > { %p897_p3 = pnand %p896_p0, %p895_p13 }
  0x1b   : > { %p898_p5 = pneg %p897_p3 }
  0x1d   : > { %p903_p10 = pnand %p901_p7, %p898_p5 }
  0x1f   : > { %906 = shalt.err (!%p903_p10)
}
  0x20   : > { %s907_s7 = scalar_lea.vmem %s127_s23, 128  ;;  %p915_p1 = scmp.lt.s32.totalorder %s127_s23, %s127_s23 }
  0x21   : > { %p908_p9 = scmp.ne.s32.totalorder %s127_s23, %s907_s7  ;;  %p916_p8 = scmp.lt.s32.totalorder %s907_s7, %s907_s7 }
  0x23   : > { %p910_p6 = pnand %p908_p9, %p896_p0  ;;  %p917_p2 = por %p916_p8, %p915_p1 }
  0x25   : > { %p911_p4 = pneg %p910_p6 }
  0x27   : > { %p918_p12 = pnand %p917_p2, %p911_p4 }
  0x29   : > { %921 = shalt.err (!%p918_p12)
}
  0x2a   : > { %830 = dma.hbm_to_vmem [thread:$0]  (!%p1123_p11), %s1286_s0, 128, %s127_s23, [#allocation3]  }
  0x2b   : > { %p1300_p1 = scmp.ne.s32.totalorder %s1299_s27, 0  ;;  %p68_p2 = scmp.ne.s32.totalorder %s1026_s11, %s1022_s10 }
  0x2c   : > { %p69_p4 = scmp.eq.s32.totalorder %s1038_s14, 0  ;;  %p840_p6 = scmp.lt.s32.totalorder %s1038_s14, 2 }
  0x2d   : > { %s1315_s25 = smov (%p1300_p1, %s28_s25), 0  ;;  %p1301_p12 = scmp.ne.s32.totalorder %s1294_s18, 0 }
  0x2e   : > { %s57_s16 = ssub.s32 %s1034_s13, %s1315_s25  ;;  %p70_p9 = por %p69_p4, %p68_p2 }
  0x2f   : > { %p59_p8 = scmp.eq.s32.totalorder %s57_s16, 0  ;;  %p1161_p13 = por %p1301_p12, %p68_p2 }
  0x30   : > { %s137_s24 = sand.u32 1, %s1026_s11   ;;  %s759_s27 = sshll.u32 %s1034_s13, 7 }
  0x31   : > { %s1169_s28 = scalar_select %p59_p8, %s1026_s11, %s61_s26  }
  0x32   : > { %s758_s23 = sshll.u32 %s137_s24, 3  ;;  %s1175_s3 = scalar_lea.hbm %s1287_s1, %s759_s27 }
  0x33   : > { %s141_s18 = scalar_lea.vmem [#allocation5], %s758_s23  ;;  %p1179_p11 = pnand %p840_p6, %p70_p9 }
  0x34   : > { %s150_s4 = sshll.u32 %s141_s18, 4  ;;  %s138_s26 = scalar_lea.sflag [#allocation6], %s137_s24  ;;  %s1177_s4 = int_to_ptr.vmem [resolvable:$true] %s150_s4 }
  0x35   : > { %s922_s6 = scalar_lea.hbm %s1175_s3, 128  ;;  %p924_p3 = pneg %p1179_p11 }
  0x36   : > { %p923_p0 = scmp.ne.s32.totalorder %s1175_s3, %s922_s6  ;;  %s927_s15 = scalar_lea.hbm %s1287_s1, 256 }
  0x37   : > { %p928_p10 = scmp.lt.u32.totalorder %s1175_s3, %s1287_s1  ;;  %p929_p1 = scmp.lt.u32.totalorder %s927_s15, %s922_s6 }
  0x38   : > { %p925_p5 = pnand %p924_p3, %p923_p0  ;;  %p931_p4 = scmp.lt.u32.totalorder %s922_s6, %s1175_s3 }
  0x39   : > { %p930_p2 = por %p929_p1, %p928_p10 }
  0x3a   : > { %p926_p7 = pneg %p925_p5 }
  0x3b   : > { %p932_p6 = por %p931_p4, %p930_p2 }
  0x3d   : > { %p933_p8 = pnand %p932_p6, %p926_p7 }
  0x3f   : > { %936 = shalt.err (!%p933_p8)
}
  0x40   : > { %s937_s24 = scalar_lea.vmem %s1177_s4, 128  ;;  %s1041_s27 = smov [#allocation5]  }
  0x41   : > { %p938_p9 = scmp.ne.s32.totalorder %s1177_s4, %s937_s24  ;;  %s942_s29 = sshll.u32 %s1041_s27, 4  ;;  %s943_s29 = int_to_ptr.vmem [resolvable:$false] %s942_s29 }
  0x42   : > { %s944_s30 = scalar_lea.vmem %s943_s29, 256  ;;  %p945_p5 = scmp.lt.s32.totalorder %s1177_s4, %s943_s29 }
  0x43   : > { %p940_p12 = pnand %p938_p9, %p924_p3  ;;  %p946_p10 = scmp.lt.s32.totalorder %s944_s30, %s937_s24 }
  0x45   : > { %p941_p0 = pneg %p940_p12  ;;  %p947_p1 = por %p946_p10, %p945_p5 }
  0x47   : > { %p948_p2 = pnand %p947_p1, %p941_p0 }
  0x49   : > { %951 = shalt.err (!%p948_p2)
}
  0x4a   : > { %834 = dma.hbm_to_vmem [thread:$0]  (!%p1179_p11), %s1175_s3, 128, %s1177_s4, %s138_s26  }
  0x4b   : > { %p1304_p7 = scmp.ne.s32.totalorder %s1297_s21, 0 }
  0x4c   : > { %p1305_p3 = scmp.ne.s32.totalorder (!%p1304_p7), %s1293_s17, 0 }
  0x4d   : > { %159 = sbr.rel (%p1304_p7) target bundleno = 345 (0x159), region = 28 }
  0x54   : > { %1005 = dma.done.wait (%p1305_p3), [#allocation3], 128  }
  0x55   : > { %1007 = vsyncadd (%p1305_p3), [#allocation3], 4294967168  ;;  %s1215_s18 = sand.u32 1, %s1022_s10   ;;  %p1306_p11 = scmp.ne.s32.totalorder %s1295_s19, 0 }
  0x56   : > { %s762_s5 = sshll.u32 %s1215_s18, 3  ;;  %s166_s6 = scalar_lea.sflag [#allocation6], %s1215_s18 }
  0x57   : > { %s169_s3 = scalar_lea.vmem [#allocation5], %s762_s5 }
  0x58   : > { %1009 = dma.done.wait (%p1306_p11), %s166_s6, 128  }
  0x59   : > { %1011 = vsyncadd (%p1306_p11), %s166_s6, 4294967168  ;;  %v1042_v0 = vmov 0.0   ;;  %vm1043_vm0 = vmmov 0   ;;  %vm192_vm1 = vcmask 64512   ;;  %v191_v1 = vld [vmem:[%s169_s3] sm:$0xff]  ;;  %v190_v2 = vld [vmem:[#allocation2] sm:$0xff] }
  0x5a   : > { %795 = vmatprep.subr.mxu0 %v1042_v0  ;;  %797 = vmatprep.mubr.msk.f32.mxu0 %vm1043_vm0, %v1042_v0  ;;  %v197_v3 = vand.u32 4294901760, %v191_v1  ;;  %v194_v4 = vsel %vm192_vm1, %v190_v2, 0  ;;  %s765_s17 = sshll.u32 %s1030_s12, 7  ;;  %s189_s19 = scalar_lea.vmem [#allocation7], %s762_s5 }
  0x5b   : > { %780 = vmatprep.subr.mxu1 %v1042_v0  ;;  %782 = vmatprep.mubr.msk.f32.mxu1 %vm1043_vm0, %v1042_v0  ;;  %v262_v5 = vand.u32 4294901760, %v194_v4  ;;  %s659_s21 = sshll.u32 %s189_s19, 4  ;;  %s1237_s7 = scalar_lea.hbm %s1288_s2, %s765_s17  ;;  %s1239_s21 = int_to_ptr.vmem [resolvable:$true] %s659_s21 }
  0x5c   : > { %v274_v6 = vsub.f32 %v191_v1, %v197_v3  ;;  %796 = vmatpush3.msra.mxu0 %v197_v3  ;;  %781 = vmatpush3.msra.mxu1 %v197_v3  ;;  %s644_s8 = scalar_lea.sflag [#allocation4], %s1215_s18  ;;  %s952_s15 = scalar_lea.vmem %s1239_s21, 128 }
  0x5d   : > { %v263_v7 = vsub.f32 %v194_v4, %v262_v5  ;;  %785 = vmatprep.subr.mxu1 %v1042_v0  ;;  %800 = vmatprep.subr.mxu0 %v1042_v0  ;;  %p953_p4 = scmp.ne.s32.totalorder %s1239_s21, %s952_s15  ;;  %s1044_s12 = smov [#allocation7]  }
  0x5e   : > { %v275_v8 = vand.u32 4294901760, %v274_v6  ;;  %s956_s16 = sshll.u32 %s1044_s12, 4  ;;  %s957_s16 = int_to_ptr.vmem [resolvable:$false] %s956_s16 }
  0x5f   : > { %v264_v9 = vand.u32 4294901760, %v263_v7  ;;  %p954_p6 = pnand %p953_p4, %p1161_p13  ;;  %s958_s23 = scalar_lea.vmem %s957_s16, 256 }
  0x60   : > { %v276_v10 = vsub.f32 %v274_v6, %v275_v8  ;;  %p959_p9 = scmp.lt.s32.totalorder %s1239_s21, %s957_s16  ;;  %p960_p12 = scmp.lt.s32.totalorder %s958_s23, %s952_s15 }
  0x61   : > { %798 = vmatmul.mubr.f32.vlgmr.msra.gmra.mrb[0].mxu0 %v264_v9  ;;  %v265_v11 = vsub.f32 %v263_v7, %v264_v9  ;;  %p955_p8 = pneg %p954_p6 }
  0x62   : > { %v277_v12 = vand.u32 4294901760, %v276_v10  ;;  %801 = vmatpush3.msra.mxu0 %v275_v8  ;;  %802 = vmatprep.mubr.msk.f32.mxu0 %vm1043_vm0, %v1042_v0  ;;  %p961_p0 = por %p960_p12, %p959_p9 }
  0x63   : > { %v266_v13 = vand.u32 4294901760, %v265_v11  ;;  %805 = vmatprep.subr.mxu0 %v1042_v0 }
  0x64   : > { %p962_p5 = pnand %p961_p0, %p955_p8 }
  0x65   : > { %783 = vmatmul.mubr.f32.vlgmr.msra.gmra.mrb[0].mxu1 %v266_v13 }
  0x66   : > { %786 = vmatpush3.msra.mxu1 %v277_v12  ;;  %787 = vmatprep.mubr.msk.f32.mxu1 %vm1043_vm0, %v1042_v0 }
  0x67   : > { %790 = vmatprep.subr.mxu1 %v1042_v0 }
  0x69   : > { %803 = vmatmul.mubr.f32.vlgmr.msra.gmra.mrb[0].mxu0 %v262_v5 }
  0x6a   : > { %806 = vmatpush3.msra.mxu0 %v197_v3  ;;  %807 = vmatprep.mubr.msk.f32.mxu0 %vm1043_vm0, %v1042_v0 }
  0x6d   : > { %788 = vmatmul.mubr.f32.vlgmr.msra.gmra.mrb[0].mxu1 %v262_v5 }
  0x6e   : > { %791 = vmatpush3.msra.mxu1 %v274_v6  ;;  %792 = vmatprep.mubr.msk.f32.mxu1 %vm1043_vm0, %v1042_v0 }
  0x71   : > { %808 = vmatmul.mubr.f32.vlgmr.msra.gmra.mrb[0].mxu0 %v262_v5 }
  0x75   : > { %793 = vmatmul.mubr.f32.vlgmr.msra.gmra.mrb[0].mxu1 %v263_v7 }
 0x144   : > { %v638_v14 = vpop.f32.mrb[0].mxu0 }
 0x145   : > { %v809_v15 = vpop.f32.mrb[1].mxu0 }
 0x148   : > { %v418_v16 = vpop.f32.mrb[0].mxu1 }
 0x149   : > { %v810_v17 = vadd.f32 %v638_v14, %v418_v16  ;;  %v794_v18 = vpop.f32.mrb[1].mxu1 }
 0x14b   : > { %642 = vst [vmem:[%s189_s19] sm:$0xff] %v810_v17 }
 0x14c   : > { %965 = shalt.err (!%p962_p5)
}
 0x14d   : > { %s966_s24 = scalar_lea.hbm %s1237_s7, 128  ;;  %s970_s30 = scalar_lea.hbm %s1288_s2, 256 }
 0x14e   : > { %p967_p10 = scmp.ne.s32.totalorder %s1237_s7, %s966_s24  ;;  %p971_p7 = scmp.lt.u32.totalorder %s1237_s7, %s1288_s2 }
 0x14f   : > { %p972_p3 = scmp.lt.u32.totalorder %s970_s30, %s966_s24  ;;  %p974_p4 = scmp.lt.u32.totalorder %s966_s24, %s1237_s7 }
 0x150   : > { %p968_p1 = pnand %p967_p10, %p1161_p13 }
 0x151   : > { %p973_p11 = por %p972_p3, %p971_p7 }
 0x152   : > { %p969_p2 = pneg %p968_p1 }
 0x153   : > { %p975_p6 = por %p974_p4, %p973_p11 }
 0x155   : > { %p976_p8 = pnand %p975_p6, %p969_p2 }
 0x157   : > { %979 = shalt.err (!%p976_p8)
}
 0x158   : > { %825 = dma.vmem_to_hbm [thread:$0]  (%p1161_p13), %s1239_s21, 128, %s1237_s7, %s644_s8  }
 0x159 PF: > { %s671_s6 = sand.u32 1, %s1018_s9   ;;  %p1307_p9 = scmp.ne.s32.totalorder %s1296_s20, 0 }
 0x15a   : > { %p1308_p12 = scmp.ge.s32.totalorder %s1038_s14, 2  ;;  %s672_s3 = scalar_lea.sflag [#allocation4], %s671_s6 }
 0x15c   : > { %p836_p0 = pnand %p1308_p12, %p1307_p9 }
 0x15e   : > { %1013 = dma.done.wait (!%p836_p0), %s672_s3, 128  }
 0x15f   : > { %1015 = vsyncadd (!%p836_p0), %s672_s3, 4294967168  ;;  %s19_s14 = sadd.s32 1, %s1038_s14   ;;  %s1309_s9 = smov %s1022_s10 }
 0x160   : > { %p16_p5 = scmp.ge.s32.totalorder %s19_s14, 4   ;;  %s1310_s10 = smov %s1026_s11 }
 0x161   : > { %s1311_s11 = smov %s1169_s28  ;;  %s1312_s12 = smov %s1034_s13 }
 0x162   : > { %s1313_s13 = smov %s1315_s25  ;;  %18 = sbr.rel (!%p16_p5) target bundleno = 7 (0x7), region = 78 }
 0x169   :  { %677 = vsyncpa [#allocation3], 1 }
 0x16a   :  { %679 = vsyncpa [#allocation3 + $0x1], 1 }
 0x16b   :  { %680 = vsyncpa [#allocation6], 1 }
 0x16c   :  { %682 = vsyncpa [#allocation6 + $0x1], 1 }
 0x16d   :  { %683 = vsyncpa [#allocation4], 1 }
 0x16e   :  { %685 = vsyncpa [#allocation4 + $0x1], 1 }

</bundles_post_ra>
